<compile_context>
chip_gen: v7x
topology: tpu7x:2x2x1
jax: 0.10.0
libtpu: 0.0.40
codegen_flags: <defaults>
</compile_context>

<pallas_src>
from functools import partial

import numpy as np
import jax
import jax.numpy as jnp
from jax.experimental import pallas as pl
from jax.experimental.pallas import tpu as pltpu


# ----------------------------------------------------------------------------
# Tiling helpers
# ----------------------------------------------------------------------------
def _round_up(x, m):
    return ((x + m - 1) // m) * m


def _choose_m_tile(M, target, align=16):
    """Return (tile, padded_M): tile is a multiple of `align` (bf16 sublane
    packing) and padded_M is a multiple of tile (pad instead of tm=M fallback)."""
    if M <= target:
        t = _round_up(M, align)
        return t, t
    t = (target // align) * align
    while t >= align:
        if M % t == 0:
            return t, M
        t -= align
    t = (target // align) * align
    return t, _round_up(M, t)


# ----------------------------------------------------------------------------
# Fused matmul kernels (full K resident; single MXU dot + fused f32 epilogue)
# ----------------------------------------------------------------------------
def _conv_mm_kernel(act, has_add, x_ref, w_ref, b_ref, *rest):
    """o = act(x @ w + bias) [+ add]   (add applied AFTER the activation)."""
    if has_add:
        add_ref, o_ref = rest
    else:
        (o_ref,) = rest
    y = jnp.dot(x_ref[0], w_ref[...], preferred_element_type=jnp.float32)
    y = y + b_ref[...]
    if act == "relu":
        y = jnp.maximum(y, 0.0)
    elif act == "tanh":
        y = jnp.tanh(y)
    if has_add:
        y = y + add_ref[0]
    o_ref[0] = y.astype(o_ref.dtype)


def _phase_mm_kernel(act, x_ref, w_ref, b_ref, o_ref):
    """Per-sub-pixel-phase o = act(x_p @ w_p + bias)."""
    y = jnp.dot(x_ref[0, 0], w_ref[0], preferred_element_type=jnp.float32)
    y = y + b_ref[...]
    if act == "relu":
        y = jnp.maximum(y, 0.0)
    elif act == "tanh":
        y = jnp.tanh(y)
    o_ref[0, 0] = y.astype(o_ref.dtype)


def fused_matmul(x, w, bias, act, add=None, out_dtype=jnp.bfloat16,
                 tm_target=1024):
    """act(x @ w + bias) [+ add], grid = (batch, M-tiles), K/N collapsed.

    x   : (B, M, K)  activations / im2col patches (bf16)
    w   : (K, N)     weights (bf16, pre-cast at init)
    bias: (N,)       f32
    add : optional (B, N) f32 row added AFTER the activation
    """
    B, M, K = x.shape
    N = w.shape[1]
    tm, Mp = _choose_m_tile(M, tm_target)
    if Mp != M:
        x = jnp.pad(x, ((0, 0), (0, Mp - M), (0, 0)))
    grid = (B, Mp // tm)

    bias2 = bias.reshape(1, N).astype(jnp.float32)
    in_specs = [
        pl.BlockSpec((1, tm, K), lambda b, i: (b, i, 0)),
        pl.BlockSpec((K, N), lambda b, i: (0, 0)),       # grid-invariant
        pl.BlockSpec((1, N), lambda b, i: (0, 0)),       # grid-invariant
    ]
    inputs = [x.astype(jnp.bfloat16), w, bias2]

    has_add = add is not None
    if has_add:
        in_specs.append(pl.BlockSpec((1, 1, N), lambda b, i: (b, 0, 0)))
        inputs.append(add.reshape(B, 1, N).astype(jnp.float32))

    cost = pl.CostEstimate(
        flops=2 * B * Mp * K * N,
        transcendentals=(B * Mp * N if act == "tanh" else 0),
        bytes_accessed=2 * B * Mp * K + 2 * K * N
                       + B * Mp * N * np.dtype(out_dtype).itemsize)

    out = pl.pallas_call(
        partial(_conv_mm_kernel, act, has_add),
        out_shape=jax.ShapeDtypeStruct((B, Mp, N), out_dtype),
        grid=grid,
        in_specs=in_specs,
        out_specs=pl.BlockSpec((1, tm, N), lambda b, i: (b, i, 0)),
        compiler_params=pltpu.CompilerParams(
            dimension_semantics=("parallel", "parallel")),
        cost_estimate=cost,
    )(*inputs)
    return out[:, :M] if Mp != M else out


def fused_phase_matmul(x4, w4, bias, act, out_dtype=jnp.bfloat16,
                       tm_target=1024):
    """Per-phase act(x4[b,p] @ w4[p] + bias); phases are a parallel grid axis.

    x4  : (B, 4, M, Kp) bf16 phase patches
    w4  : (4, Kp, Cout) bf16 per-phase weights
    bias: (Cout,) f32 (shared across phases)
    """
    B, P, M, Kp = x4.shape
    Cout = w4.shape[-1]
    tm, Mp = _choose_m_tile(M, tm_target)
    if Mp != M:
        x4 = jnp.pad(x4, ((0, 0), (0, 0), (0, Mp - M), (0, 0)))
    grid = (B, P, Mp // tm)
    bias2 = bias.reshape(1, Cout).astype(jnp.float32)

    cost = pl.CostEstimate(
        flops=2 * B * P * Mp * Kp * Cout,
        transcendentals=(B * P * Mp * Cout if act == "tanh" else 0),
        bytes_accessed=2 * B * P * Mp * Kp + 2 * P * Kp * Cout
                       + B * P * Mp * Cout * np.dtype(out_dtype).itemsize)

    out = pl.pallas_call(
        partial(_phase_mm_kernel, act),
        out_shape=jax.ShapeDtypeStruct((B, P, Mp, Cout), out_dtype),
        grid=grid,
        in_specs=[
            pl.BlockSpec((1, 1, tm, Kp), lambda b, p, i: (b, p, i, 0)),
            pl.BlockSpec((1, Kp, Cout), lambda b, p, i: (p, 0, 0)),
            pl.BlockSpec((1, Cout), lambda b, p, i: (0, 0)),
        ],
        out_specs=pl.BlockSpec((1, 1, tm, Cout), lambda b, p, i: (b, p, i, 0)),
        compiler_params=pltpu.CompilerParams(
            dimension_semantics=("parallel", "parallel", "parallel")),
        cost_estimate=cost,
    )(x4.astype(jnp.bfloat16), w4, bias2)
    return out[:, :, :M] if Mp != M else out


# ----------------------------------------------------------------------------
# Conv / ConvTranspose plumbing (patch extraction is glue; matmuls are Pallas)
# ----------------------------------------------------------------------------
def im2col_s2p1k3(x):
    """im2col for Conv2d(kernel=3, stride=2, padding=1), NHWC input (bf16)."""
    B, H, W, C = x.shape
    OH = (H - 1) // 2 + 1
    OW = (W - 1) // 2 + 1
    xp = jnp.pad(x, ((0, 0), (1, 1), (1, 1), (0, 0)))
    cols = []
    for kh in range(3):
        for kw in range(3):
            cols.append(xp[:, kh:kh + 2 * OH:2, kw:kw + 2 * OW:2, :])
    # feature order: (kh, kw, ci) -- matches weight layout from init
    return jnp.concatenate(cols, axis=-1), OH, OW


def conv_s2p1k3(x, w, b, act, add=None, out_dtype=jnp.bfloat16):
    """Conv2d(k=3, s=2, p=1) + bias + act (+ post-act add), one Pallas matmul."""
    B = x.shape[0]
    patches, OH, OW = im2col_s2p1k3(x)
    K = patches.shape[-1]
    out = fused_matmul(patches.reshape(B, OH * OW, K), w, b, act,
                       add=add, out_dtype=out_dtype)
    return out.reshape(B, OH, OW, -1)


def conv_transpose_s2p1k4(x, w_phase, bias, act, out_dtype=jnp.bfloat16):
    """ConvTranspose2d(k=4, s=2, p=1) as 4 dense per-phase matmuls (one call).

    Sub-pixel decomposition: output pixel (2i+a, 2j+b) is a 2x2 conv of the
    input -> each phase (a,b) is an (H*W, 4*Cin) x (4*Cin, Cout) matmul.
    w_phase has shape (4, 4*Cin, Cout), built once at init."""
    B, H, W, Cin = x.shape
    Cout = w_phase.shape[-1]

    xp = jnp.pad(x, ((0, 0), (1, 1), (1, 1), (0, 0)))
    phase_patches = []
    for a in range(2):              # output row phase
        for bph in range(2):        # output col phase
            cols = [xp[:, a + th:a + th + H, bph + tw:bph + tw + W, :]
                    for th in range(2) for tw in range(2)]
            phase_patches.append(
                jnp.concatenate(cols, axis=-1).reshape(B, 1, H * W, 4 * Cin))
    patches = jnp.concatenate(phase_patches, axis=1)      # (B, 4, H*W, 4*Cin)

    out = fused_phase_matmul(patches, w_phase, bias, act, out_dtype=out_dtype)

    # (B, 4, H*W, Cout) -> interleave phases into (B, 2H, 2W, Cout)
    out = out.reshape(B, 2, 2, H, W, Cout)
    out = jnp.transpose(out, (0, 3, 1, 4, 2, 5)).reshape(B, 2 * H, 2 * W, Cout)
    return out


# ----------------------------------------------------------------------------
# Full forward pass (matches UNetGenerator.forward)
# ----------------------------------------------------------------------------
def unet_forward(params, x_nchw, condition):
    x = jnp.transpose(x_nchw, (0, 2, 3, 1)).astype(jnp.bfloat16)  # NCHW->NHWC

    # condition Linear (trivially small) stays in XLA; its broadcast add is
    # fused into the conv2 Pallas epilogue, applied AFTER the ReLU.
    cond_lin = condition @ params["wc"] + params["bc"]             # (B, 2C)

    # encoder: Conv(1,C,3,2,1)+ReLU ; Conv(C,2C,3,2,1)+ReLU (+ condition add)
    h1 = conv_s2p1k3(x, params["w1"], params["b1"], "relu")
    h2 = conv_s2p1k3(h1, params["w2"], params["b2"], "relu", add=cond_lin)

    # decoder: ConvT(2C,C,4,2,1)+ReLU ; ConvT(C,1,4,2,1)+Tanh
    d1 = conv_transpose_s2p1k4(h2, params["wd1"], params["bd1"], "relu")
    d2 = conv_transpose_s2p1k4(d1, params["wd2"], params["bd2"], "tanh",
                               out_dtype=jnp.float32)

    return jnp.transpose(d2, (0, 3, 1, 2))                          # NHWC->NCHW


# ----------------------------------------------------------------------------
# Parameters: torch-layout init + one-time kernel-layout / bf16 conversion
# ----------------------------------------------------------------------------
def init_torch_params(key, condition_dim, C):
    ks = jax.random.split(key, 10)

    def t(k, shape, scale=0.1):
        return scale * jax.random.normal(k, shape, dtype=jnp.float32)

    return {
        "w1": t(ks[0], (C, 1, 3, 3)),          "b1": t(ks[1], (C,)),
        "w2": t(ks[2], (2 * C, C, 3, 3)),      "b2": t(ks[3], (2 * C,)),
        "wd1": t(ks[4], (2 * C, C, 4, 4)),     "bd1": t(ks[5], (C,)),
        "wd2": t(ks[6], (C, 1, 4, 4)),         "bd2": t(ks[7], (1,)),
        "wc": t(ks[8], (2 * C, condition_dim)), "bc": t(ks[9], (2 * C,)),
    }


def _conv_weight_to_matmul(w_t):
    # torch (Cout, Cin, kh, kw) -> (kh*kw*Cin, Cout), pre-cast bf16
    Cout = w_t.shape[0]
    return jnp.transpose(w_t, (2, 3, 1, 0)).reshape(-1, Cout).astype(jnp.bfloat16)


def _convT_weight_to_phases(w_t):
    # torch (Cin, Cout, 4, 4) -> per-phase (4, 4*Cin, Cout), pre-cast bf16
    wk = jnp.transpose(w_t, (2, 3, 0, 1))      # (kh, kw, Cin, Cout)
    phases = []
    for a in range(2):
        for bph in range(2):
            rows = [wk[3 - a - 2 * th, 3 - bph - 2 * tw]
                    for th in range(2) for tw in range(2)]
            phases.append(jnp.concatenate(rows, axis=0))   # (4*Cin, Cout)
    return jnp.stack(phases, axis=0).astype(jnp.bfloat16)


def kernel_params(tp):
    return {
        "w1": _conv_weight_to_matmul(tp["w1"]),  "b1": tp["b1"],
        "w2": _conv_weight_to_matmul(tp["w2"]),  "b2": tp["b2"],
        "wd1": _convT_weight_to_phases(tp["wd1"]), "bd1": tp["bd1"],
        "wd2": _convT_weight_to_phases(tp["wd2"]), "bd2": tp["bd2"],
        "wc": tp["wc"].T, "bc": tp["bc"],        # torch (out,in) -> (in,out)
    }


# ----------------------------------------------------------------------------
# Pure-XLA f32 reference (validates conv / conv-transpose tap mapping)
# ----------------------------------------------------------------------------
def reference_forward(tp, x_nchw, condition):
    dn = ("NCHW", "OIHW", "NCHW")
    cond = condition @ tp["wc"].T + tp["bc"]
    h = jax.lax.conv_general_dilated(x_nchw, tp["w1"], (2, 2),
                                     ((1, 1), (1, 1)), dimension_numbers=dn)
    h = jax.nn.relu(h + tp["b1"][None, :, None, None])
    h = jax.lax.conv_general_dilated(h, tp["w2"], (2, 2),
                                     ((1, 1), (1, 1)), dimension_numbers=dn)
    h = jax.nn.relu(h + tp["b2"][None, :, None, None])
    h = h + cond[:, :, None, None]

    def conv_t(z, w_t, b):
        # ConvTranspose2d(k=4, s=2, p=1) == flipped-kernel, lhs-dilated conv.
        wf = jnp.transpose(w_t, (1, 0, 2, 3))[:, :, ::-1, ::-1]
        y = jax.lax.conv_general_dilated(z, wf, (1, 1), ((2, 2), (2, 2)),
                                         lhs_dilation=(2, 2),
                                         dimension_numbers=dn)
        return y + b[None, :, None, None]

    h = jax.nn.relu(conv_t(h, tp["wd1"], tp["bd1"]))
    return jnp.tanh(conv_t(h, tp["wd2"], tp["bd2"]))


if __name__ == "__main__":
    key = jax.random.PRNGKey(0)
    kx, kc, kp = jax.random.split(key, 3)

    B, H, W = 2, 16, 16
    condition_dim = 8
    num_channels = 8   # small stand-in for the default 64

    x = jax.random.normal(kx, (B, 1, H, W), dtype=jnp.float32)
    cond = jax.random.normal(kc, (B, condition_dim), dtype=jnp.float32)

    torch_p = init_torch_params(kp, condition_dim, num_channels)
    params = kernel_params(torch_p)

    out = jax.jit(unet_forward)(params, x, cond)
    out = jax.block_until_ready(out)

    assert out.shape == (B, 1, H, W), out.shape
    assert bool(jnp.all(jnp.isfinite(out)))
    assert bool(jnp.all(jnp.abs(out) <= 1.0 + 1e-6))   # tanh range sanity

    # Validate conv / conv-transpose tap mapping against XLA (bf16 kernels vs
    # f32 reference -> loose tolerance).
    ref = jax.jit(reference_forward)(torch_p, x, cond)
    err = float(jnp.max(jnp.abs(out - ref)))
    assert err < 5e-2, f"max abs error vs XLA reference: {err}"

    print("KERNEL_OK")
</pallas_src>

<mosaic_0001>
module attributes {stable_mosaic.version = 11 : i64} {
  func.func @_conv_mm_kernel(%arg0: i32, %arg1: i32, %arg2: memref<1x64x9xbf16, #tpu.memory_space<vmem>>, %arg3: memref<9x8xbf16, #tpu.memory_space<vmem>>, %arg4: memref<1x8xf32, #tpu.memory_space<vmem>>, %arg5: memref<1x64x8xbf16, #tpu.memory_space<vmem>>) attributes {dimension_semantics = [#tpu.dimension_semantics<parallel>, #tpu.dimension_semantics<parallel>], iteration_bounds = array<i64: 2, 1>, scalar_prefetch = 0 : i64, scratch_operands = 0 : i64, tpu.core_type = #tpu.core_type<tc>, window_params = [{transform_indices = @transform_0, window_bounds = array<i64: 1, 64, 9>}, {pipeline_mode = #tpu.pipeline_mode<synchronous>, transform_indices = @transform_1, window_bounds = array<i64: 9, 8>}, {pipeline_mode = #tpu.pipeline_mode<synchronous>, transform_indices = @transform_2, window_bounds = array<i64: 1, 8>}, {transform_indices = @transform_3, window_bounds = array<i64: 1, 64, 8>}]} {
    %c0 = arith.constant 0 : index
    %c0_0 = arith.constant 0 : index
    %c0_1 = arith.constant 0 : index
    %0 = vector.load %arg2[%c0, %c0_0, %c0_1] : memref<1x64x9xbf16, #tpu.memory_space<vmem>>, vector<1x64x9xbf16>
    %1 = vector.shape_cast %0 : vector<1x64x9xbf16> to vector<64x9xbf16>
    %c0_2 = arith.constant 0 : index
    %c0_3 = arith.constant 0 : index
    %2 = vector.load %arg3[%c0_2, %c0_3] : memref<9x8xbf16, #tpu.memory_space<vmem>>, vector<9x8xbf16>
    %cst = arith.constant dense<0.000000e+00> : vector<64x8xf32>
    %3 = tpu.matmul %1, %2, %cst {dimension_numbers = #tpu.dot_dimension_numbers<[1], [0], [0], [1], [0, 0, 1, 1], [], []>} : vector<64x9xbf16>, vector<9x8xbf16>, vector<64x8xf32> -> vector<64x8xf32>
    %c0_4 = arith.constant 0 : index
    %c0_5 = arith.constant 0 : index
    %4 = vector.load %arg4[%c0_4, %c0_5] : memref<1x8xf32, #tpu.memory_space<vmem>>, vector<1x8xf32>
    %5 = vector.broadcast %4 : vector<1x8xf32> to vector<64x8xf32>
    %6 = arith.addf %3, %5 : vector<64x8xf32>
    %cst_6 = arith.constant 0.000000e+00 : f32
    %7 = vector.broadcast %cst_6 : f32 to vector<64x8xf32>
    %8 = arith.maximumf %6, %7 : vector<64x8xf32>
    %9 = arith.truncf %8 : vector<64x8xf32> to vector<64x8xbf16>
    %c0_7 = arith.constant 0 : index
    %c0_8 = arith.constant 0 : index
    %c0_9 = arith.constant 0 : index
    %10 = vector.load %arg5[%c0_7, %c0_8, %c0_9] : memref<1x64x8xbf16, #tpu.memory_space<vmem>>, vector<1x64x8xbf16>
    %11 = vector.shape_cast %10 : vector<1x64x8xbf16> to vector<64x8xbf16>
    %12 = vector.shape_cast %9 : vector<64x8xbf16> to vector<1x64x8xbf16>
    tpu.vector_store %arg5[%c0_7, %c0_8, %c0_9], %12 {strides = array<i32>} : memref<1x64x8xbf16, #tpu.memory_space<vmem>>, vector<1x64x8xbf16>,
    return
  }
  func.func @transform_0(%arg0: i32, %arg1: i32) -> (i32, i32, i32) {
    %c0_i32 = arith.constant 0 : i32
    %c0_i32_0 = arith.constant 0 : i32
    return %arg0, %arg1, %c0_i32 : i32, i32, i32
  }
  func.func @transform_1(%arg0: i32, %arg1: i32) -> (i32, i32) {
    %c0_i32 = arith.constant 0 : i32
    %c0_i32_0 = arith.constant 0 : i32
    %c0_i32_1 = arith.constant 0 : i32
    return %c0_i32, %c0_i32_0 : i32, i32
  }
  func.func @transform_2(%arg0: i32, %arg1: i32) -> (i32, i32) {
    %c0_i32 = arith.constant 0 : i32
    %c0_i32_0 = arith.constant 0 : i32
    %c0_i32_1 = arith.constant 0 : i32
    return %c0_i32, %c0_i32_0 : i32, i32
  }
  func.func @transform_3(%arg0: i32, %arg1: i32) -> (i32, i32, i32) {
    %c0_i32 = arith.constant 0 : i32
    %c0_i32_0 = arith.constant 0 : i32
    return %arg0, %arg1, %c0_i32 : i32, i32, i32
  }
}

module attributes {stable_mosaic.version = 11 : i64} {
  func.func @_conv_mm_kernel(%arg0: i32, %arg1: i32, %arg2: memref<1x16x72xbf16, #tpu.memory_space<vmem>>, %arg3: memref<72x16xbf16, #tpu.memory_space<vmem>>, %arg4: memref<1x16xf32, #tpu.memory_space<vmem>>, %arg5: memref<1x1x16xf32, #tpu.memory_space<vmem>>, %arg6: memref<1x16x16xbf16, #tpu.memory_space<vmem>>) attributes {dimension_semantics = [#tpu.dimension_semantics<parallel>, #tpu.dimension_semantics<parallel>], iteration_bounds = array<i64: 2, 1>, scalar_prefetch = 0 : i64, scratch_operands = 0 : i64, tpu.core_type = #tpu.core_type<tc>, window_params = [{transform_indices = @transform_0, window_bounds = array<i64: 1, 16, 72>}, {pipeline_mode = #tpu.pipeline_mode<synchronous>, transform_indices = @transform_1, window_bounds = array<i64: 72, 16>}, {pipeline_mode = #tpu.pipeline_mode<synchronous>, transform_indices = @transform_2, window_bounds = array<i64: 1, 16>}, {transform_indices = @transform_3, window_bounds = array<i64: 1, 1, 16>}, {transform_indices = @transform_4, window_bounds = array<i64: 1, 16, 16>}]} {
    %c0 = arith.constant 0 : index
    %c0_0 = arith.constant 0 : index
    %c0_1 = arith.constant 0 : index
    %0 = vector.load %arg2[%c0, %c0_0, %c0_1] : memref<1x16x72xbf16, #tpu.memory_space<vmem>>, vector<1x16x72xbf16>
    %1 = vector.shape_cast %0 : vector<1x16x72xbf16> to vector<16x72xbf16>
    %c0_2 = arith.constant 0 : index
    %c0_3 = arith.constant 0 : index
    %2 = vector.load %arg3[%c0_2, %c0_3] : memref<72x16xbf16, #tpu.memory_space<vmem>>, vector<72x16xbf16>
    %cst = arith.constant dense<0.000000e+00> : vector<16x16xf32>
    %3 = tpu.matmul %1, %2, %cst {dimension_numbers = #tpu.dot_dimension_numbers<[1], [0], [0], [1], [0, 0, 1, 1], [], []>} : vector<16x72xbf16>, vector<72x16xbf16>, vector<16x16xf32> -> vector<16x16xf32>
    %c0_4 = arith.constant 0 : index
    %c0_5 = arith.constant 0 : index
    %4 = vector.load %arg4[%c0_4, %c0_5] : memref<1x16xf32, #tpu.memory_space<vmem>>, vector<1x16xf32>
    %5 = vector.broadcast %4 : vector<1x16xf32> to vector<16x16xf32>
    %6 = arith.addf %3, %5 : vector<16x16xf32>
    %cst_6 = arith.constant 0.000000e+00 : f32
    %7 = vector.broadcast %cst_6 : f32 to vector<16x16xf32>
    %8 = arith.maximumf %6, %7 : vector<16x16xf32>
    %c0_7 = arith.constant 0 : index
    %c0_8 = arith.constant 0 : index
    %c0_9 = arith.constant 0 : index
    %9 = vector.load %arg5[%c0_7, %c0_8, %c0_9] : memref<1x1x16xf32, #tpu.memory_space<vmem>>, vector<1x1x16xf32>
    %10 = vector.shape_cast %9 : vector<1x1x16xf32> to vector<1x16xf32>
    %11 = vector.broadcast %10 : vector<1x16xf32> to vector<16x16xf32>
    %12 = arith.addf %8, %11 : vector<16x16xf32>
    %13 = arith.truncf %12 : vector<16x16xf32> to vector<16x16xbf16>
    %c0_10 = arith.constant 0 : index
    %c0_11 = arith.constant 0 : index
    %c0_12 = arith.constant 0 : index
    %14 = vector.load %arg6[%c0_10, %c0_11, %c0_12] : memref<1x16x16xbf16, #tpu.memory_space<vmem>>, vector<1x16x16xbf16>
    %15 = vector.shape_cast %14 : vector<1x16x16xbf16> to vector<16x16xbf16>
    %16 = vector.shape_cast %13 : vector<16x16xbf16> to vector<1x16x16xbf16>
    tpu.vector_store %arg6[%c0_10, %c0_11, %c0_12], %16 {strides = array<i32>} : memref<1x16x16xbf16, #tpu.memory_space<vmem>>, vector<1x16x16xbf16>,
    return
  }
  func.func @transform_0(%arg0: i32, %arg1: i32) -> (i32, i32, i32) {
    %c0_i32 = arith.constant 0 : i32
    %c0_i32_0 = arith.constant 0 : i32
    return %arg0, %arg1, %c0_i32 : i32, i32, i32
  }
  func.func @transform_1(%arg0: i32, %arg1: i32) -> (i32, i32) {
    %c0_i32 = arith.constant 0 : i32
    %c0_i32_0 = arith.constant 0 : i32
    %c0_i32_1 = arith.constant 0 : i32
    return %c0_i32, %c0_i32_0 : i32, i32
  }
  func.func @transform_2(%arg0: i32, %arg1: i32) -> (i32, i32) {
    %c0_i32 = arith.constant 0 : i32
    %c0_i32_0 = arith.constant 0 : i32
    %c0_i32_1 = arith.constant 0 : i32
    return %c0_i32, %c0_i32_0 : i32, i32
  }
  func.func @transform_3(%arg0: i32, %arg1: i32) -> (i32, i32, i32) {
    %c0_i32 = arith.constant 0 : i32
    %c0_i32_0 = arith.constant 0 : i32
    %c0_i32_1 = arith.constant 0 : i32
    return %arg0, %c0_i32, %c0_i32_0 : i32, i32, i32
  }
  func.func @transform_4(%arg0: i32, %arg1: i32) -> (i32, i32, i32) {
    %c0_i32 = arith.constant 0 : i32
    %c0_i32_0 = arith.constant 0 : i32
    return %arg0, %arg1, %c0_i32 : i32, i32, i32
  }
}

module attributes {stable_mosaic.version = 11 : i64} {
  func.func @_phase_mm_kernel(%arg0: i32, %arg1: i32, %arg2: i32, %arg3: memref<1x1x16x64xbf16, #tpu.memory_space<vmem>>, %arg4: memref<1x64x8xbf16, #tpu.memory_space<vmem>>, %arg5: memref<1x8xf32, #tpu.memory_space<vmem>>, %arg6: memref<1x1x16x8xbf16, #tpu.memory_space<vmem>>) attributes {dimension_semantics = [#tpu.dimension_semantics<parallel>, #tpu.dimension_semantics<parallel>, #tpu.dimension_semantics<parallel>], iteration_bounds = array<i64: 2, 4, 1>, scalar_prefetch = 0 : i64, scratch_operands = 0 : i64, tpu.core_type = #tpu.core_type<tc>, window_params = [{transform_indices = @transform_0, window_bounds = array<i64: 1, 1, 16, 64>}, {transform_indices = @transform_1, window_bounds = array<i64: 1, 64, 8>}, {pipeline_mode = #tpu.pipeline_mode<synchronous>, transform_indices = @transform_2, window_bounds = array<i64: 1, 8>}, {transform_indices = @transform_3, window_bounds = array<i64: 1, 1, 16, 8>}]} {
    %c0 = arith.constant 0 : index
    %c0_0 = arith.constant 0 : index
    %c0_1 = arith.constant 0 : index
    %c0_2 = arith.constant 0 : index
    %0 = vector.load %arg3[%c0, %c0_0, %c0_1, %c0_2] : memref<1x1x16x64xbf16, #tpu.memory_space<vmem>>, vector<1x1x16x64xbf16>
    %1 = vector.shape_cast %0 : vector<1x1x16x64xbf16> to vector<16x64xbf16>
    %c0_3 = arith.constant 0 : index
    %c0_4 = arith.constant 0 : index
    %c0_5 = arith.constant 0 : index
    %2 = vector.load %arg4[%c0_3, %c0_4, %c0_5] : memref<1x64x8xbf16, #tpu.memory_space<vmem>>, vector<1x64x8xbf16>
    %3 = vector.shape_cast %2 : vector<1x64x8xbf16> to vector<64x8xbf16>
    %cst = arith.constant dense<0.000000e+00> : vector<16x8xf32>
    %4 = tpu.matmul %1, %3, %cst {dimension_numbers = #tpu.dot_dimension_numbers<[1], [0], [0], [1], [0, 0, 1, 1], [], []>} : vector<16x64xbf16>, vector<64x8xbf16>, vector<16x8xf32> -> vector<16x8xf32>
    %c0_6 = arith.constant 0 : index
    %c0_7 = arith.constant 0 : index
    %5 = vector.load %arg5[%c0_6, %c0_7] : memref<1x8xf32, #tpu.memory_space<vmem>>, vector<1x8xf32>
    %6 = vector.broadcast %5 : vector<1x8xf32> to vector<16x8xf32>
    %7 = arith.addf %4, %6 : vector<16x8xf32>
    %cst_8 = arith.constant 0.000000e+00 : f32
    %8 = vector.broadcast %cst_8 : f32 to vector<16x8xf32>
    %9 = arith.maximumf %7, %8 : vector<16x8xf32>
    %10 = arith.truncf %9 : vector<16x8xf32> to vector<16x8xbf16>
    %c0_9 = arith.constant 0 : index
    %c0_10 = arith.constant 0 : index
    %c0_11 = arith.constant 0 : index
    %c0_12 = arith.constant 0 : index
    %11 = vector.load %arg6[%c0_9, %c0_10, %c0_11, %c0_12] : memref<1x1x16x8xbf16, #tpu.memory_space<vmem>>, vector<1x1x16x8xbf16>
    %12 = vector.shape_cast %11 : vector<1x1x16x8xbf16> to vector<16x8xbf16>
    %13 = vector.shape_cast %10 : vector<16x8xbf16> to vector<1x1x16x8xbf16>
    tpu.vector_store %arg6[%c0_9, %c0_10, %c0_11, %c0_12], %13 {strides = array<i32>} : memref<1x1x16x8xbf16, #tpu.memory_space<vmem>>, vector<1x1x16x8xbf16>,
    return
  }
  func.func @transform_0(%arg0: i32, %arg1: i32, %arg2: i32) -> (i32, i32, i32, i32) {
    %c0_i32 = arith.constant 0 : i32
    %c0_i32_0 = arith.constant 0 : i32
    return %arg0, %arg1, %arg2, %c0_i32 : i32, i32, i32, i32
  }
  func.func @transform_1(%arg0: i32, %arg1: i32, %arg2: i32) -> (i32, i32, i32) {
    %c0_i32 = arith.constant 0 : i32
    %c0_i32_0 = arith.constant 0 : i32
    %c0_i32_1 = arith.constant 0 : i32
    return %arg1, %c0_i32, %c0_i32_0 : i32, i32, i32
  }
  func.func @transform_2(%arg0: i32, %arg1: i32, %arg2: i32) -> (i32, i32) {
    %c0_i32 = arith.constant 0 : i32
    %c0_i32_0 = arith.constant 0 : i32
    %c0_i32_1 = arith.constant 0 : i32
    return %c0_i32, %c0_i32_0 : i32, i32
  }
  func.func @transform_3(%arg0: i32, %arg1: i32, %arg2: i32) -> (i32, i32, i32, i32) {
    %c0_i32 = arith.constant 0 : i32
    %c0_i32_0 = arith.constant 0 : i32
    return %arg0, %arg1, %arg2, %c0_i32 : i32, i32, i32, i32
  }
}

module attributes {stable_mosaic.version = 11 : i64} {
  func.func @_phase_mm_kernel(%arg0: i32, %arg1: i32, %arg2: i32, %arg3: memref<1x1x64x32xbf16, #tpu.memory_space<vmem>>, %arg4: memref<1x32x1xbf16, #tpu.memory_space<vmem>>, %arg5: memref<1x1xf32, #tpu.memory_space<vmem>>, %arg6: memref<1x1x64x1xf32, #tpu.memory_space<vmem>>) attributes {dimension_semantics = [#tpu.dimension_semantics<parallel>, #tpu.dimension_semantics<parallel>, #tpu.dimension_semantics<parallel>], iteration_bounds = array<i64: 2, 4, 1>, scalar_prefetch = 0 : i64, scratch_operands = 0 : i64, tpu.core_type = #tpu.core_type<tc>, window_params = [{transform_indices = @transform_0, window_bounds = array<i64: 1, 1, 64, 32>}, {transform_indices = @transform_1, window_bounds = array<i64: 1, 32, 1>}, {pipeline_mode = #tpu.pipeline_mode<synchronous>, transform_indices = @transform_2, window_bounds = array<i64: 1, 1>}, {transform_indices = @transform_3, window_bounds = array<i64: 1, 1, 64, 1>}]} {
    %c0 = arith.constant 0 : index
    %c0_0 = arith.constant 0 : index
    %c0_1 = arith.constant 0 : index
    %c0_2 = arith.constant 0 : index
    %0 = vector.load %arg3[%c0, %c0_0, %c0_1, %c0_2] : memref<1x1x64x32xbf16, #tpu.memory_space<vmem>>, vector<1x1x64x32xbf16>
    %1 = vector.shape_cast %0 : vector<1x1x64x32xbf16> to vector<64x32xbf16>
    %c0_3 = arith.constant 0 : index
    %c0_4 = arith.constant 0 : index
    %c0_5 = arith.constant 0 : index
    %2 = vector.load %arg4[%c0_3, %c0_4, %c0_5] : memref<1x32x1xbf16, #tpu.memory_space<vmem>>, vector<1x32x1xbf16>
    %3 = vector.shape_cast %2 : vector<1x32x1xbf16> to vector<32x1xbf16>
    %cst = arith.constant dense<0.000000e+00> : vector<64x1xf32>
    %4 = tpu.matmul %1, %3, %cst {dimension_numbers = #tpu.dot_dimension_numbers<[1], [0], [0], [1], [0, 0, 1, 1], [], []>} : vector<64x32xbf16>, vector<32x1xbf16>, vector<64x1xf32> -> vector<64x1xf32>
    %c0_6 = arith.constant 0 : index
    %c0_7 = arith.constant 0 : index
    %5 = vector.load %arg5[%c0_6, %c0_7] : memref<1x1xf32, #tpu.memory_space<vmem>>, vector<1x1xf32>
    %6 = vector.broadcast %5 : vector<1x1xf32> to vector<64x1xf32>
    %7 = arith.addf %4, %6 : vector<64x1xf32>
    %8 = math.tanh %7 : vector<64x1xf32>
    %c0_8 = arith.constant 0 : index
    %c0_9 = arith.constant 0 : index
    %c0_10 = arith.constant 0 : index
    %c0_11 = arith.constant 0 : index
    %9 = vector.load %arg6[%c0_8, %c0_9, %c0_10, %c0_11] : memref<1x1x64x1xf32, #tpu.memory_space<vmem>>, vector<1x1x64x1xf32>
    %10 = vector.shape_cast %9 : vector<1x1x64x1xf32> to vector<64x1xf32>
    %11 = vector.shape_cast %8 : vector<64x1xf32> to vector<1x1x64x1xf32>
    tpu.vector_store %arg6[%c0_8, %c0_9, %c0_10, %c0_11], %11 {strides = array<i32>} : memref<1x1x64x1xf32, #tpu.memory_space<vmem>>, vector<1x1x64x1xf32>,
    return
  }
  func.func @transform_0(%arg0: i32, %arg1: i32, %arg2: i32) -> (i32, i32, i32, i32) {
    %c0_i32 = arith.constant 0 : i32
    %c0_i32_0 = arith.constant 0 : i32
    return %arg0, %arg1, %arg2, %c0_i32 : i32, i32, i32, i32
  }
  func.func @transform_1(%arg0: i32, %arg1: i32, %arg2: i32) -> (i32, i32, i32) {
    %c0_i32 = arith.constant 0 : i32
    %c0_i32_0 = arith.constant 0 : i32
    %c0_i32_1 = arith.constant 0 : i32
    return %arg1, %c0_i32, %c0_i32_0 : i32, i32, i32
  }
  func.func @transform_2(%arg0: i32, %arg1: i32, %arg2: i32) -> (i32, i32) {
    %c0_i32 = arith.constant 0 : i32
    %c0_i32_0 = arith.constant 0 : i32
    %c0_i32_1 = arith.constant 0 : i32
    return %c0_i32, %c0_i32_0 : i32, i32
  }
  func.func @transform_3(%arg0: i32, %arg1: i32, %arg2: i32) -> (i32, i32, i32, i32) {
    %c0_i32 = arith.constant 0 : i32
    %c0_i32_0 = arith.constant 0 : i32
    return %arg0, %arg1, %arg2, %c0_i32 : i32, i32, i32, i32
  }
}

</mosaic_0001>

<bundles_post_ra>
// kernel: unet_forward.5
= control target key start
LH: loop header
LB: loop body
LE: loop exit
PB: predicated region body
PF: predicated region fallthrough
CT: control target
= control target key end

     0   :  { %s598_s15 = smov 0   ;;  %s600_s16 = smov 0   ;;  %s656_s0 = inlined_call_operand.vmem [shape: bf16[2,16,72], index: 0, kind: input, shape index: {}]   ;;  %s657_s1 = inlined_call_operand.vmem [shape: bf16[72,16], index: 1, kind: input, shape index: {}]   ;;  %s658_s2 = inlined_call_operand.vmem [shape: f32[1,16], index: 2, kind: input, shape index: {}]   ;;  %s659_s3 = inlined_call_operand.vmem [shape: f32[2,1,16], index: 3, kind: input, shape index: {}]   ;;  %s660_s4 = inlined_call_operand.vmem [shape: bf16[2,16,16], index: 4, kind: output, shape index: {}]  }
   0x1   :  { %s602_s17 = smov 0  }
   0x2 LB: > { %s26_s18 = sadd.s32 1, %s565_s16  ;;  %p473_p0 = scmp.ge.s32.totalorder %s569_s17, 1  ;;  %s569_s17 = sphi %s602_s17, %s14_s17   ;;  %s565_s16 = sphi %s600_s16, %s662_s16   ;;  %s561_s15 = sphi %s598_s15, %s661_s15  }
   0x3   : > { %p28_p1 = scmp.ge.s32.totalorder %s26_s18, 2  ;;  %p191_p2 = scmp.lt.s32.totalorder %s569_s17, 3 }
   0x5   : > { %s664_s18 = smov (%p28_p1, %s26_s18), 0  ;;  %p192_p3 = pnand %p473_p0, %p191_p2 }
   0x6   : > { %v541_v0 = vld [vmem:[%s657_s1] sm:$0xff] (!%p192_p3)   ;;  %v571_v1 = vmov (!%p192_p3), 0.0   ;;  %v542_v2 = vld [vmem:[%s657_s1 + $0x8] sm:$0xff] (!%p192_p3)   ;;  %vm572_vm0 = vmmov (!%p192_p3), 0   ;;  %p229_p4 = scmp.lt.s32.totalorder (!%p192_p3), %s561_s15, 1  ;;  %v543_v3 = vld [vmem:[%s657_s1 + $0x10] sm:$0xff] (!%p192_p3)  }
   0x7   : > { %195 = sbr.rel (%p192_p3) target bundleno = 250 (0xfa), region = 36  ;;  %501 = vmatprep.subr.bf16.mxu0 (!%p192_p3), %v571_v1  ;;  %511 = vmatprep.mubr.msk.bf16.mxu0 (!%p192_p3), %vm572_vm0, %v571_v1  ;;  %v544_v4 = vld [vmem:[%s657_s1 + $0x18] sm:$0xff] (!%p192_p3)   ;;  %v545_v5 = vld [vmem:[%s657_s1 + $0x20] ss:$0 sps:$4 sm:$0xff] (!%p192_p3)   ;;  %vm306_vm1 = vcmask (!%p192_p3), 1043456   ;;  %vm302_vm2 = vcmask (!%p192_p3), 588800  }
   0x8   : > { %502 = vmatpush3.bf16.msra.mxu0 (!%p192_p3), %v541_v0  ;;  %v308_v6 = vsel (!%p192_p3), %vm306_vm1, %v545_v5, 0  ;;  %v478_v8 = vld [vmem:[%s658_s2] ss:$0 sm:$0xff] (!%p192_p3)  ;;  %vm370_vm3 = vcmask (!%p192_p3), 125952  }
   0x9   : > { %503 = vmatprep.subr.bf16.mxu0 (!%p192_p3), %v571_v1 }
   0xc   : > { %504 = vmatpush3.bf16.msra.mxu0 (!%p192_p3), %v542_v2 }
   0xd   : > { %505 = vmatprep.subr.bf16.mxu0 (!%p192_p3), %v571_v1 }
   0xe   : > { %s666_s15 = smov (!%p229_p4, %s561_s15), 1 }
   0xf   : > { %s491_s25 = sshll.u32 %s666_s15, 3  ;;  %s240_s11 = scalar_lea.vmem %s659_s3, %s666_s15 }
  0x10   : > { %s236_s28 = scalar_lea.vmem %s656_s0, %s491_s25  ;;  %506 = vmatpush3.bf16.msra.mxu0 %v543_v3  ;;  %v486_v12 = vld [vmem:[%s240_s11] ss:$0 sm:$0xff]  ;;  %s249_s14 = scalar_lea.vmem %s660_s4, %s491_s25 }
  0x11   : > { %507 = vmatprep.subr.bf16.mxu0 %v571_v1  ;;  %v546_v7 = vld [vmem:[%s236_s28] sm:$0xff]  }
  0x14   : > { %508 = vmatpush3.bf16.msra.mxu0 %v544_v4 }
  0x15   : > { %509 = vmatprep.subr.bf16.mxu0 %v571_v1 }
  0x18   : > { %510 = vmatpush3.bf16.msra.mxu0 %v308_v6 }
  0x1b   : > { %512 = vmatmul.mubr.msk.bf16.vlgmr.msra.gmra.mrb[0].mxu0 %vm302_vm2, %v546_v7 }
  0xee   : > { %v344_v9 = vpop.f32.mrb[0].mxu0 }
  0xef   : > { %v345_v10 = vadd.f32 %v478_v8, %v344_v9  ;;  %v513_v11 = vpop.f32.mrb[1].mxu0 }
  0xf0   : > { %v347_v13 = vpop.f32.mrb[2].mxu0 }
  0xf1   : > { %v351_v14 = vmax.f32 %v345_v10, 0.0  ;;  %v348_v15 = vadd.f32 %v478_v8, %v347_v13  ;;  %v514_v16 = vpop.f32.mrb[3].mxu0 }
  0xf3   : > { %v360_v17 = vadd.f32 %v486_v12, %v351_v14  ;;  %v352_v18 = vmax.f32 %v348_v15, 0.0 }
  0xf5   : > { %v493_v19 = vpack.c.bf16 %v360_v17, %v360_v17  ;;  %v361_v20 = vadd.f32 %v486_v12, %v352_v18 }
  0xf7   : > { %371 = vst.msk [vmem:[%s249_s14] sm:$0xf] %vm370_vm3, %v493_v19  ;;  %v494_v21 = vpack.c.bf16 %v361_v20, %v361_v20 }
  0xf9   : > { %372 = vst.msk [vmem:[%s249_s14 + $0x4] sm:$0xf] %vm370_vm3, %v494_v21 }
  0xfa PF: > { %s14_s17 = sadd.s32 1, %s569_s17   ;;  %s661_s15 = smov %s565_s16 }
  0xfb   : > { %p11_p5 = scmp.ge.s32.totalorder %s14_s17, 4   ;;  %s662_s16 = smov %s664_s18 }
  0xfd   :  { %13 = sbr.rel (!%p11_p5) target bundleno = 2 (0x2), region = 69 }

// kernel: unet_forward.4
= control target key start
LH: loop header
LB: loop body
LE: loop exit
PB: predicated region body
PF: predicated region fallthrough
CT: control target
= control target key end

     0   :  { %s605_s12 = smov 0   ;;  %s607_s13 = smov 0   ;;  %s659_s0 = inlined_call_operand.vmem [shape: bf16[2,64,9], index: 0, kind: input, shape index: {}]   ;;  %s660_s1 = inlined_call_operand.vmem [shape: bf16[9,8], index: 1, kind: input, shape index: {}]   ;;  %s661_s2 = inlined_call_operand.vmem [shape: f32[1,8], index: 2, kind: input, shape index: {}]   ;;  %s662_s3 = inlined_call_operand.vmem [shape: bf16[2,64,8], index: 3, kind: output, shape index: {}]  }
   0x1   :  { %s609_s14 = smov 0  }
   0x2 LB: > { %s25_s15 = sadd.s32 1, %s578_s13  ;;  %p478_p0 = scmp.ge.s32.totalorder %s582_s14, 1  ;;  %s582_s14 = sphi %s609_s14, %s13_s14   ;;  %s578_s13 = sphi %s607_s13, %s664_s13   ;;  %s574_s12 = sphi %s605_s12, %s663_s12  }
   0x3   : > { %p27_p1 = scmp.ge.s32.totalorder %s25_s15, 2  ;;  %p158_p2 = scmp.lt.s32.totalorder %s582_s14, 3 }
   0x5   : > { %s666_s15 = smov (%p27_p1, %s25_s15), 0  ;;  %p159_p3 = pnand %p478_p0, %p158_p2 }
   0x6   : > { %v555_v0 = vld [vmem:[%s660_s1] sm:$0x1f] (!%p159_p3)   ;;  %vm266_vm0 = vcmask (!%p159_p3), 1043456   ;;  %vm267_vm1 = vcmask (!%p159_p3), 1044480   ;;  %p191_p4 = scmp.lt.s32.totalorder (!%p159_p3), %s574_s12, 1  ;;  %v584_v1 = vmov (!%p159_p3), 65535  }
   0x7   : > { %162 = sbr.rel (%p159_p3) target bundleno = 241 (0xf1), region = 32  ;;  %v268_v2 = vsel (!%p159_p3), %vm266_vm0, 4294967295, %v584_v1  ;;  %vm253_vm2 = vcmask (!%p159_p3), 72704   ;;  %v483_v9 = vld [vmem:[%s661_s2] ss:$0 sm:$0xff] (!%p159_p3)  ;;  %vm378_vm3 = vcmask (!%p159_p3), 60416  }
   0x8   : > { %v269_v3 = vsel (!%p159_p3), %vm267_vm1, %v268_v2, 0 }
   0x9   : > { %v271_v4 = vand.u32 (!%p159_p3), %v555_v0, %v269_v3 }
   0xb   : > { %518 = vmatprep.subr.bf16.mxu0 (!%p159_p3), %v271_v4  ;;  %528 = vmatprep.subr.bf16.mxu1 (!%p159_p3), %v271_v4 }
   0xc   : > { %519 = vmatpush3.bf16.msra.mxu0 (!%p159_p3), %v271_v4  ;;  %529 = vmatpush3.bf16.msra.mxu1 (!%p159_p3), %v271_v4 }
   0xe   : > { %s668_s12 = smov (!%p191_p4, %s574_s12), 1 }
   0xf   : > { %s503_s18 = sshll.u32 %s668_s12, 5 }
  0x10   : > { %s198_s21 = scalar_lea.vmem %s659_s0, %s503_s18  ;;  %s208_s26 = scalar_lea.vmem %s662_s3, %s503_s18 }
  0x11   : > { %v556_v5 = vld [vmem:[%s198_s21] sm:$0xff]   ;;  %v557_v6 = vld [vmem:[%s198_s21 + $0x10] sm:$0xff]   ;;  %v558_v7 = vld [vmem:[%s198_s21 + $0x8] sm:$0xff]  }
  0x12   : > { %520 = vmatprep.mubr.msk.bf16.mxu0 %vm253_vm2, %v556_v5  ;;  %524 = vmatprep.mubr.msk.bf16.mxu1 %vm253_vm2, %v557_v6  ;;  %v559_v8 = vld [vmem:[%s198_s21 + $0x18] sm:$0xff]  }
  0x13   : > { %521 = vmatmul.mubr.msk.bf16.vlgmr.msra.gmra.mrb[0].mxu0 %vm253_vm2, %v558_v7  ;;  %525 = vmatmul.mubr.msk.bf16.vlgmr.msra.gmra.mrb[0].mxu1 %vm253_vm2, %v559_v8 }
  0xe6   : > { %v522_v10 = vpop.f32.mrb[0].mxu0  ;;  %v526_v12 = vpop.f32.mrb[0].mxu1 }
  0xe7   : > { %v316_v11 = vadd.f32 %v522_v10, %v483_v9  ;;  %v307_v13 = vpop.f32.mrb[1].mxu0  ;;  %v332_v14 = vadd.f32 %v526_v12, %v483_v9  ;;  %v323_v16 = vpop.f32.mrb[1].mxu1 }
  0xe8   : > { %v308_v15 = vadd.f32 %v483_v9, %v307_v13  ;;  %v523_v17 = vpop.f32.mrb[2].mxu0  ;;  %v324_v19 = vadd.f32 %v483_v9, %v323_v16  ;;  %v527_v21 = vpop.f32.mrb[2].mxu1 }
  0xe9   : > { %v340_v18 = vmax.f32 %v316_v11, 0.0  ;;  %v319_v20 = vadd.f32 %v523_v17, %v483_v9  ;;  %v310_v22 = vpop.f32.mrb[3].mxu0  ;;  %v344_v23 = vmax.f32 %v332_v14, 0.0  ;;  %v335_v25 = vadd.f32 %v527_v21, %v483_v9  ;;  %v326_v27 = vpop.f32.mrb[3].mxu1 }
  0xea   : > { %v338_v24 = vmax.f32 %v308_v15, 0.0  ;;  %v311_v26 = vadd.f32 %v483_v9, %v310_v22  ;;  %v342_v29 = vmax.f32 %v324_v19, 0.0  ;;  %v327_v31 = vadd.f32 %v483_v9, %v326_v27 }
  0xeb   : > { %v507_v28 = vpack.c.bf16 %v340_v18, %v340_v18  ;;  %v341_v30 = vmax.f32 %v319_v20, 0.0  ;;  %v511_v32 = vpack.c.bf16 %v344_v23, %v344_v23  ;;  %v345_v34 = vmax.f32 %v335_v25, 0.0 }
  0xec   : > { %v505_v33 = vpack.c.bf16 %v338_v24, %v338_v24  ;;  %v339_v35 = vmax.f32 %v311_v26, 0.0  ;;  %v509_v36 = vpack.c.bf16 %v342_v29, %v342_v29  ;;  %v343_v38 = vmax.f32 %v327_v31, 0.0 }
  0xed   : > { %381 = vst.msk [vmem:[%s208_s26 + $0x8] sm:$0xf] %vm378_vm3, %v507_v28  ;;  %v508_v37 = vpack.c.bf16 %v341_v30, %v341_v30  ;;  %385 = vst.msk [vmem:[%s208_s26 + $0x18] sm:$0xf] %vm378_vm3, %v511_v32  ;;  %v512_v39 = vpack.c.bf16 %v345_v34, %v345_v34 }
  0xee   : > { %379 = vst.msk [vmem:[%s208_s26] sm:$0xf] %vm378_vm3, %v505_v33  ;;  %v506_v40 = vpack.c.bf16 %v339_v35, %v339_v35  ;;  %383 = vst.msk [vmem:[%s208_s26 + $0x10] sm:$0xf] %vm378_vm3, %v509_v36  ;;  %v510_v41 = vpack.c.bf16 %v343_v38, %v343_v38 }
  0xef   : > { %382 = vst.msk [vmem:[%s208_s26 + $0xc] sm:$0xf] %vm378_vm3, %v508_v37  ;;  %386 = vst.msk [vmem:[%s208_s26 + $0x1c] sm:$0xf] %vm378_vm3, %v512_v39 }
  0xf0   : > { %380 = vst.msk [vmem:[%s208_s26 + $0x4] sm:$0xf] %vm378_vm3, %v506_v40  ;;  %384 = vst.msk [vmem:[%s208_s26 + $0x14] sm:$0xf] %vm378_vm3, %v510_v41 }
  0xf1 PF: > { %s13_s14 = sadd.s32 1, %s582_s14   ;;  %s663_s12 = smov %s578_s13 }
  0xf2   : > { %p10_p5 = scmp.ge.s32.totalorder %s13_s14, 4   ;;  %s664_s13 = smov %s666_s15 }
  0xf4   :  { %12 = sbr.rel (!%p10_p5) target bundleno = 2 (0x2), region = 62 }

// kernel: unet_forward.6
= control target key start
LH: loop header
LB: loop body
LE: loop exit
PB: predicated region body
PF: predicated region fallthrough
CT: control target
= control target key end

     0   :  { %s646_s12 = smov 0   ;;  %s648_s13 = smov 0   ;;  %s703_s0 = inlined_call_operand.vmem [shape: bf16[2,4,16,64], index: 0, kind: input, shape index: {}]   ;;  %s704_s1 = inlined_call_operand.vmem [shape: bf16[4,64,8], index: 1, kind: input, shape index: {}]   ;;  %s705_s2 = inlined_call_operand.vmem [shape: f32[1,8], index: 2, kind: input, shape index: {}]   ;;  %s706_s3 = inlined_call_operand.vmem [shape: bf16[2,4,16,8], index: 3, kind: output, shape index: {}]  }
   0x1   :  { %s650_s14 = smov 0   ;;  %s652_s15 = smov 0  }
   0x2   :  { %s654_s16 = smov 0  }
   0x3 LB: > { %s28_s17 = sadd.s32 1, %s614_s14  ;;  %s32_s18 = sadd.s32 1, %s618_s15  ;;  %s622_s16 = sphi %s654_s16, %s13_s16   ;;  %s618_s15 = sphi %s652_s15, %s710_s15   ;;  %s614_s14 = sphi %s650_s14, %s709_s14   ;;  %s610_s13 = sphi %s648_s13, %s708_s13   ;;  %s606_s12 = sphi %s646_s12, %s707_s12  }
   0x4   : > { %p30_p0 = scmp.ge.s32.totalorder %s28_s17, 4  ;;  %p497_p1 = scmp.ge.s32.totalorder %s622_s16, 1 }
   0x5   : > { %p183_p2 = scmp.lt.s32.totalorder %s622_s16, 9 }
   0x6   : > { %s712_s17 = smov (%p30_p0, %s28_s17), 0  ;;  %s714_s18 = smov (!%p30_p0, %s32_s18), %s618_s15 }
   0x7   : > { %p184_p3 = pnand %p497_p1, %p183_p2  ;;  %p34_p4 = scmp.ge.s32.totalorder %s714_s18, 2 }
   0x8   : > { %p231_p5 = scmp.lt.s32.totalorder (!%p184_p3), %s606_s12, 3  ;;  %p229_p6 = scmp.lt.s32.totalorder (!%p184_p3), %s610_s13, 1  ;;  %v624_v0 = vmov (!%p184_p3), 0.0   ;;  %vm625_vm0 = vmmov (!%p184_p3), 0   ;;  %vm308_vm1 = vcmask (!%p184_p3), 523264   ;;  %vm363_vm2 = vcmask (!%p184_p3), 60416  }
   0x9   : > { %s716_s18 = smov (%p34_p4, %s714_s18), 0  ;;  %187 = sbr.rel (%p184_p3) target bundleno = 256 (0x100), region = 32 }
   0xa   : > { %525 = vmatprep.subr.bf16.mxu0 (!%p184_p3), %v624_v0  ;;  %533 = vmatprep.mubr.msk.bf16.mxu0 (!%p184_p3), %vm625_vm0, %v624_v0  ;;  %v506_v6 = vld [vmem:[%s705_s2] ss:$0 sm:$0xff] (!%p184_p3) }
  0x10   : > { %s718_s12 = smov (!%p231_p5, %s606_s12), 3  ;;  %s720_s13 = smov (!%p229_p6, %s610_s13), 1 }
  0x11   : > { %s517_s19 = sshll.u32 %s718_s12, 5  ;;  %s498_s20 = sshll.u32 %s718_s12, 1 }
  0x12   : > { %s246_s23 = scalar_lea.vmem %s704_s1, %s517_s19  ;;  %s499_s24 = sshll.u32 %s720_s13, 3 }
  0x13   : > { %v579_v1 = vld [vmem:[%s246_s23] sm:$0xff]   ;;  %s238_s25 = sadd.s32 %s499_s24, %s498_s20  ;;  %v580_v2 = vld [vmem:[%s246_s23 + $0x8] sm:$0xff]   ;;  %v581_v3 = vld [vmem:[%s246_s23 + $0x10] sm:$0xff]  }
  0x14   : > { %s500_s26 = sshll.u32 %s238_s25, 2  ;;  %526 = vmatpush3.bf16.msra.mxu0 %v579_v1  ;;  %v582_v4 = vld [vmem:[%s246_s23 + $0x18] sm:$0xff]  }
  0x15   : > { %527 = vmatprep.subr.bf16.mxu0 %v624_v0  ;;  %s240_s29 = scalar_lea.vmem %s703_s0, %s500_s26  ;;  %s259_s7 = scalar_lea.vmem %s706_s3, %s500_s26 }
  0x16   : > { %v583_v5 = vld [vmem:[%s240_s29] sm:$0xff]  }
  0x18   : > { %528 = vmatpush3.bf16.msra.mxu0 %v580_v2 }
  0x19   : > { %529 = vmatprep.subr.bf16.mxu0 %v624_v0 }
  0x1c   : > { %530 = vmatpush3.bf16.msra.mxu0 %v581_v3 }
  0x1d   : > { %531 = vmatprep.subr.bf16.mxu0 %v624_v0 }
  0x20   : > { %532 = vmatpush3.bf16.msra.mxu0 %v582_v4 }
  0x23   : > { %534 = vmatmul.mubr.msk.bf16.vlgmr.msra.gmra.mrb[0].mxu0 %vm308_vm1, %v583_v5 }
  0xf6   : > { %v346_v7 = vpop.f32.mrb[0].mxu0 }
  0xf7   : > { %v347_v8 = vadd.f32 %v506_v6, %v346_v7  ;;  %v535_v9 = vpop.f32.mrb[1].mxu0 }
  0xf8   : > { %v349_v10 = vpop.f32.mrb[2].mxu0 }
  0xf9   : > { %v353_v11 = vmax.f32 %v347_v8, 0.0  ;;  %v350_v12 = vadd.f32 %v506_v6, %v349_v10  ;;  %v536_v13 = vpop.f32.mrb[3].mxu0 }
  0xfb   : > { %v518_v14 = vpack.c.bf16 %v353_v11, %v353_v11  ;;  %v354_v15 = vmax.f32 %v350_v12, 0.0 }
  0xfd   : > { %364 = vst.msk [vmem:[%s259_s7] sm:$0xf] %vm363_vm2, %v518_v14  ;;  %v519_v16 = vpack.c.bf16 %v354_v15, %v354_v15 }
  0xff   : > { %365 = vst.msk [vmem:[%s259_s7 + $0x4] sm:$0xf] %vm363_vm2, %v519_v16 }
 0x100 PF: > { %s13_s16 = sadd.s32 1, %s622_s16   ;;  %s707_s12 = smov %s614_s14 }
 0x101   : > { %p10_p7 = scmp.ge.s32.totalorder %s13_s16, 10   ;;  %s708_s13 = smov %s618_s15 }
 0x102   : > { %s709_s14 = smov %s712_s17  ;;  %s710_s15 = smov %s716_s18 }
 0x103   :  { %12 = sbr.rel (!%p10_p7) target bundleno = 3 (0x3), region = 65 }

// kernel: unet_forward.7
= control target key start
LH: loop header
LB: loop body
LE: loop exit
PB: predicated region body
PF: predicated region fallthrough
CT: control target
= control target key end

     0   :  { %s711_s14 = smov 0   ;;  %s713_s15 = smov 0   ;;  %s777_s0 = inlined_call_operand.vmem [shape: bf16[2,4,64,32], index: 0, kind: input, shape index: {}]   ;;  %s778_s1 = inlined_call_operand.vmem [shape: bf16[4,32,1], index: 1, kind: input, shape index: {}]   ;;  %s779_s2 = inlined_call_operand.<no memory space> [shape: f32[1,1], index: 2, kind: input, shape index: {}]   ;;  %s780_s3 = inlined_call_operand.vmem [shape: f32[2,4,64,1], index: 3, kind: output, shape index: {}]  }
   0x1   :  { %v8_v0 = vstv %s779_s2  ;;  %s715_s16 = smov 0   ;;  %s717_s17 = smov 0  }
   0x2   :  { %9 = vst [vmem:[#allocation2] sm:$0x1] %v8_v0  ;;  %s719_s18 = smov 0  }
   0x3 LB: > { %s30_s2 = sadd.s32 1, %s678_s16  ;;  %s34_s19 = sadd.s32 1, %s682_s17  ;;  %s686_s18 = sphi %s719_s18, %s15_s18   ;;  %s682_s17 = sphi %s717_s17, %s784_s17   ;;  %s678_s16 = sphi %s715_s16, %s783_s16   ;;  %s674_s15 = sphi %s713_s15, %s782_s15   ;;  %s670_s14 = sphi %s711_s14, %s781_s14  }
   0x4   : > { %p32_p0 = scmp.ge.s32.totalorder %s30_s2, 4  ;;  %p541_p1 = scmp.ge.s32.totalorder %s686_s18, 1 }
   0x5   : > { %p185_p2 = scmp.lt.s32.totalorder %s686_s18, 9 }
   0x6   : > { %s786_s2 = smov (%p32_p0, %s30_s2), 0  ;;  %s788_s19 = smov (!%p32_p0, %s34_s19), %s682_s17 }
   0x7   : > { %p186_p3 = pnand %p541_p1, %p185_p2  ;;  %p36_p4 = scmp.ge.s32.totalorder %s788_s19, 2 }
   0x8   : > { %p231_p5 = scmp.lt.s32.totalorder (!%p186_p3), %s674_s15, 1  ;;  %p233_p6 = scmp.lt.s32.totalorder (!%p186_p3), %s670_s14, 3  ;;  %vm315_vm0 = vcmask (!%p186_p3), 261120   ;;  %vm401_vm1 = vcmask (!%p186_p3), 7168  }
   0x9   : > { %s790_s19 = smov (%p36_p4, %s788_s19), 0  ;;  %189 = sbr.rel (%p186_p3) target bundleno = 262 (0x106), region = 32 }
   0xa   : > { %v550_v7 = vld [vmem:[#allocation2] ss:$0 sm:$0xff] (!%p186_p3) }
  0x10   : > { %s792_s15 = smov (!%p231_p5, %s674_s15), 1  ;;  %s794_s14 = smov (!%p233_p6, %s670_s14), 3 }
  0x11   : > { %s543_s20 = sshll.u32 %s792_s15, 5  ;;  %s542_s21 = sshll.u32 %s794_s14, 3 }
  0x12   : > { %s563_s22 = sshll.u32 %s794_s14, 4  ;;  %s741_s23 = sadd.s32 %s543_s20, %s542_s21 }
  0x13   : > { %s248_s26 = scalar_lea.vmem %s778_s1, %s563_s22  ;;  %s544_s27 = sshll.u32 %s741_s23, 2 }
  0x14   : > { %v626_v1 = vld [vmem:[%s248_s26] sm:$0xff]   ;;  %v627_v2 = vld [vmem:[%s248_s26 + $0x8] sm:$0xff]   ;;  %s242_s30 = scalar_lea.vmem %s777_s0, %s544_s27  ;;  %s549_s4 = sshll.u32 %s741_s23, 3 }
  0x15   : > { %570 = vmatprep.subr.bf16.mxu0 %v626_v1  ;;  %582 = vmatprep.subr.bf16.mxu1 %v626_v1  ;;  %v628_v3 = vld [vmem:[%s242_s30] sm:$0xff]   ;;  %v629_v4 = vld [vmem:[%s242_s30 + $0x10] sm:$0xff]   ;;  %v630_v5 = vld [vmem:[%s242_s30 + $0x8] sm:$0xff]   ;;  %s261_s7 = scalar_lea.vmem %s780_s3, %s549_s4 }
  0x16   : > { %571 = vmatpush3.bf16.msra.mxu0 %v626_v1  ;;  %584 = vmatpush3.bf16.msra.mxu1 %v626_v1  ;;  %v631_v6 = vld [vmem:[%s242_s30 + $0x18] sm:$0xff]  }
  0x17   : > { %572 = vmatprep.subr.bf16.mxu0 %v627_v2  ;;  %583 = vmatprep.subr.bf16.mxu1 %v627_v2 }
  0x18   : > { %574 = vmatprep.mubr.msk.bf16.mxu0 %vm315_vm0, %v628_v3  ;;  %578 = vmatprep.mubr.msk.bf16.mxu1 %vm315_vm0, %v629_v4 }
  0x1a   : > { %573 = vmatpush3.bf16.msra.mxu0 %v627_v2  ;;  %585 = vmatpush3.bf16.msra.mxu1 %v627_v2 }
  0x1d   : > { %575 = vmatmul.mubr.msk.bf16.vlgmr.msra.gmra.mrb[0].mxu0 %vm315_vm0, %v630_v5  ;;  %579 = vmatmul.mubr.msk.bf16.vlgmr.msra.gmra.mrb[0].mxu1 %vm315_vm0, %v631_v6 }
  0xf0   : > { %v576_v8 = vpop.f32.mrb[0].mxu0  ;;  %v580_v9 = vpop.f32.mrb[0].mxu1 }
  0xf1   : > { %v371_v10 = vadd.f32 %v576_v8, %v550_v7  ;;  %v387_v11 = vadd.f32 %v580_v9, %v550_v7  ;;  %v362_v12 = vpop.f32.mrb[1].mxu0  ;;  %v378_v13 = vpop.f32.mrb[1].mxu1 }
  0xf2   : > { %v363_v14 = vadd.f32 %v550_v7, %v362_v12  ;;  %v379_v15 = vadd.f32 %v550_v7, %v378_v13  ;;  %v577_v16 = vpop.f32.mrb[2].mxu0  ;;  %v581_v17 = vpop.f32.mrb[2].mxu1 }
  0xf3   : > { %632 = vtanh.f32 %v371_v10  ;;  %v374_v18 = vadd.f32 %v577_v16, %v550_v7  ;;  %v365_v19 = vpop.f32.mrb[3].mxu0  ;;  %v381_v20 = vpop.f32.mrb[3].mxu1  ;;  %v390_v21 = vadd.f32 %v581_v17, %v550_v7 }
  0xf4   : > { %634 = vtanh.f32 %v387_v11  ;;  %v366_v22 = vadd.f32 %v550_v7, %v365_v19  ;;  %v382_v23 = vadd.f32 %v550_v7, %v381_v20 }
  0xf5   : > { %636 = vtanh.f32 %v363_v14 }
  0xf6   : > { %638 = vtanh.f32 %v379_v15 }
  0xf7   : > { %640 = vtanh.f32 %v374_v18 }
  0xf8   : > { %642 = vtanh.f32 %v390_v21 }
  0xf9   : > { %644 = vtanh.f32 %v366_v22 }
  0xfa   : > { %646 = vtanh.f32 %v382_v23 }
  0xfd   : > { %v633_v24 = vpop.eup %632 }
  0xfe   : > { %v635_v25 = vpop.eup %634  ;;  %404 = vst.msk [vmem:[%s261_s7 + $0x10] sm:$0xff] %vm401_vm1, %v633_v24 }
  0xff   : > { %v637_v26 = vpop.eup %636  ;;  %408 = vst.msk [vmem:[%s261_s7 + $0x30] sm:$0xff] %vm401_vm1, %v635_v25 }
 0x100   : > { %v639_v27 = vpop.eup %638  ;;  %402 = vst.msk [vmem:[%s261_s7] sm:$0xff] %vm401_vm1, %v637_v26 }
 0x101   : > { %v641_v28 = vpop.eup %640  ;;  %406 = vst.msk [vmem:[%s261_s7 + $0x20] sm:$0xff] %vm401_vm1, %v639_v27 }
 0x102   : > { %v643_v29 = vpop.eup %642  ;;  %405 = vst.msk [vmem:[%s261_s7 + $0x18] sm:$0xff] %vm401_vm1, %v641_v28 }
 0x103   : > { %v645_v30 = vpop.eup %644  ;;  %409 = vst.msk [vmem:[%s261_s7 + $0x38] sm:$0xff] %vm401_vm1, %v643_v29 }
 0x104   : > { %v647_v31 = vpop.eup %646  ;;  %403 = vst.msk [vmem:[%s261_s7 + $0x8] sm:$0xff] %vm401_vm1, %v645_v30 }
 0x105   : > { %407 = vst.msk [vmem:[%s261_s7 + $0x28] sm:$0xff] %vm401_vm1, %v647_v31 }
 0x106 PF: > { %s15_s18 = sadd.s32 1, %s686_s18   ;;  %s781_s14 = smov %s678_s16 }
 0x107   : > { %p12_p7 = scmp.ge.s32.totalorder %s15_s18, 10   ;;  %s782_s15 = smov %s682_s17 }
 0x108   : > { %s783_s16 = smov %s786_s2  ;;  %s784_s17 = smov %s790_s19 }
 0x109   :  { %14 = sbr.rel (!%p12_p7) target bundleno = 3 (0x3), region = 65 }

</bundles_post_ra>
